<compile_context>
chip_gen: v7x
topology: tpu7x:2x2x1
jax: 0.10.0
libtpu: 0.0.40
codegen_flags: <defaults>
</compile_context>

<pallas_src>
import functools

import jax
import jax.numpy as jnp
from jax import lax
from jax.experimental import pallas as pl
from jax.experimental.pallas import tpu as pltpu


def cp_kernel(idx_ref, fbd_ref, out_ref, oh_ref, *, dim, s_pad, rank_pad):
    bv = idx_ref.shape[1]

    # Load the whole (dim, bv) index block once and upcast to int32 (cheap VPU
    # unpack); value-level row slices below avoid sub-32-bit ref slicing.
    idx = idx_ref[...].astype(jnp.int32)                         # (dim, bv)

    # Hoisted once per block (JAX does not CSE broadcast_in_dim).
    iota_s = lax.broadcasted_iota(jnp.int32, (s_pad, bv), 0)     # (s_pad, bv)

    # Build the stacked one-hot directly into the VMEM scratch slab
    # (rows k*s_pad:(k+1)*s_pad are 8-sublane aligned -> no relayout copies).
    for k in range(dim):  # dim is small and static -> unrolled
        row = idx[k:k + 1, :]                                    # (1, bv)
        oh_ref[k * s_pad:(k + 1) * s_pad, :] = (
            row == iota_s).astype(jnp.float32)                   # (s_pad, bv)

    # Single fused block-diagonal gather matmul on the MXU.
    gathered = jnp.dot(fbd_ref[...], oh_ref[...],
                       preferred_element_type=jnp.float32)       # (dim*rank_pad, bv)

    # Product over modes; k=0 slice (already lamb-scaled) seeds the product.
    prod = gathered[0:rank_pad, :]
    for k in range(1, dim):
        prod = prod * gathered[k * rank_pad:(k + 1) * rank_pad, :]

    # rank reduction as a sublane sum (XLU) -> (1, bv) lane-dense store.
    out_ref[...] = jnp.sum(prod, axis=0, keepdims=True)


def _build_blockdiag(factors, lamb, s_pad, rank_pad):
    """Block-diagonal stack of factor_k.T, lamb folded into block 0.

    Shape (dim*rank_pad, dim*s_pad); zero-padded rank rows / size rows are
    numerically inert (they contribute 0 to the final sum).
    """
    dim = len(factors)
    rank = factors[0].shape[1]
    lamb = jnp.asarray(lamb, jnp.float32).reshape(rank, 1)
    fbd = jnp.zeros((dim * rank_pad, dim * s_pad), jnp.float32)
    for k, f in enumerate(factors):
        s_k = f.shape[0]
        blk = f.T.astype(jnp.float32)                            # (rank, s_k)
        if k == 0:
            blk = blk * lamb                                     # fold lamb
        fbd = fbd.at[k * rank_pad:k * rank_pad + rank,
                     k * s_pad:k * s_pad + s_k].set(blk)
    return fbd


def _pick_block_v(vsz, dim, s_pad, rank_pad, idx_bytes,
                  target=8192, vmem_budget=16 * 1024 * 1024):
    """Largest batch block <= target that keeps the per-step VMEM footprint
    under `vmem_budget` and (when possible) leaves >= 2 grid steps (v7x TCs)."""
    per_row = (2 * dim * idx_bytes              # double-buffered idx block
               + 2 * 4                          # double-buffered out block
               + dim * s_pad * 4                # one-hot scratch slab
               + (dim * rank_pad + rank_pad) * 4)  # gathered + prod values
    cap = max(512, (vmem_budget // per_row) // 512 * 512)
    bv = min(target, cap)
    # keep at least 2 grid steps when the problem is big enough
    half = -(-vsz // 2)
    half_r = -(-half // 512) * 512
    bv = min(bv, max(512, half_r))
    return bv


def cp_forward(idx, factors, lamb, *, block_v=None):
    """idx: (vsz, dim) int; factors: list of (size_k, rank) f32; lamb: (rank,)
    -> (vsz,) f32, matching cp.forward."""
    vsz, dim = idx.shape
    assert dim == len(factors)
    rank = factors[0].shape[1]

    # Pad mode-size axis to >= 8 sublanes and rank to a multiple of 8 sublanes
    # (zero rows are inert; keeps per-mode slices (8,128)-tile aligned).
    s_max = max(f.shape[0] for f in factors)
    s_pad = max(8, -(-s_max // 8) * 8)
    rank_pad = max(8, -(-rank // 8) * 8)

    fbd = _build_blockdiag(factors, lamb, s_pad, rank_pad)

    # Narrow index dtype when mode sizes allow (cuts most of the HBM traffic
    # of this memory-bound kernel); downcast is fused with the transpose below.
    idx_dtype = jnp.int16 if s_max < 32768 else jnp.int32
    idx_bytes = jnp.dtype(idx_dtype).itemsize

    if block_v is None:
        block_v = _pick_block_v(vsz, dim, s_pad, rank_pad, idx_bytes)

    # Transpose + downcast idx to (dim, vsz) in one fused pass; pad vsz up to a
    # multiple of block_v (padded rows use index 0; outputs sliced off below).
    vsz_pad = -(-vsz // block_v) * block_v
    idx_t = jnp.asarray(idx).astype(idx_dtype).T                 # (dim, vsz)
    if vsz_pad != vsz:
        idx_t = jnp.pad(idx_t, ((0, 0), (0, vsz_pad - vsz)))

    out = pl.pallas_call(
        functools.partial(cp_kernel, dim=dim, s_pad=s_pad, rank_pad=rank_pad),
        out_shape=jax.ShapeDtypeStruct((1, vsz_pad), jnp.float32),
        grid_spec=pltpu.PrefetchScalarGridSpec(
            num_scalar_prefetch=0,
            grid=(vsz_pad // block_v,),
            in_specs=[
                pl.BlockSpec((dim, block_v), lambda i: (0, i)),
                # grid-invariant operand stays resident in VMEM
                pl.BlockSpec((dim * rank_pad, dim * s_pad), lambda i: (0, 0)),
            ],
            out_specs=pl.BlockSpec((1, block_v), lambda i: (0, i)),
            scratch_shapes=[pltpu.VMEM((dim * s_pad, block_v), jnp.float32)],
        ),
        compiler_params=pltpu.CompilerParams(
            dimension_semantics=("parallel",),
            vmem_limit_bytes=32 * 1024 * 1024),
    )(idx_t, fbd)
    return out[0, :vsz]


if __name__ == "__main__":
    # module config (matches cp(size, rank) __init__)
    size = (6, 7, 5)      # one mode-size per tensor dimension
    rank = 16
    dim = len(size)
    vsz = 1024            # number of index rows evaluated

    key = jax.random.PRNGKey(0)
    fkeys = jax.random.split(key, dim + 1)

    # deterministic parameter init: factors ~ U[0, 1) (like init.uniform_),
    # lamb = ones(rank) (update_lambda=False path)
    factors = [jax.random.uniform(fkeys[k], (size[k], rank), dtype=jnp.float32)
               for k in range(dim)]
    lamb = jnp.ones((rank,), jnp.float32)

    # deterministic integer index input (vsz, dim), column k in [0, size[k])
    ikey = fkeys[dim]
    idx_cols = []
    for k in range(dim):
        ikey, sub = jax.random.split(ikey)
        idx_cols.append(jax.random.randint(sub, (vsz,), 0, size[k], jnp.int32))
    idx = jnp.stack(idx_cols, axis=1)

    # run the Pallas kernel
    vals = jax.block_until_ready(cp_forward(idx, factors, lamb))

    # pure-JAX reference
    gathered = [factors[k][idx[:, k], :] for k in range(dim)]
    prod_ref = lamb[None, :]
    for g in gathered:
        prod_ref = prod_ref * g
    ref = jnp.sum(prod_ref, axis=-1)

    assert vals.shape == (vsz,)
    assert jnp.allclose(vals, ref, rtol=1e-5, atol=1e-5), (vals, ref)
    print("KERNEL_OK")
</pallas_src>

<mosaic_0001>
module attributes {stable_mosaic.version = 11 : i64} {
  func.func @cp_kernel(%arg0: i32, %arg1: memref<3x512xi16, #tpu.memory_space<vmem>>, %arg2: memref<48x24xf32, #tpu.memory_space<vmem>>, %arg3: memref<1x512xf32, #tpu.memory_space<vmem>>, %arg4: memref<24x512xf32, #tpu.memory_space<vmem>>) attributes {dimension_semantics = [#tpu.dimension_semantics<parallel>], iteration_bounds = array<i64: 2>, scalar_prefetch = 0 : i64, scratch_operands = 1 : i64, tpu.core_type = #tpu.core_type<tc>, window_params = [{transform_indices = @transform_0, window_bounds = array<i64: 3, 512>}, {pipeline_mode = #tpu.pipeline_mode<synchronous>, transform_indices = @transform_1, window_bounds = array<i64: 48, 24>}, {transform_indices = @transform_2, window_bounds = array<i64: 1, 512>}]} {
    %c0 = arith.constant 0 : index
    %c0_0 = arith.constant 0 : index
    %0 = vector.load %arg1[%c0, %c0_0] : memref<3x512xi16, #tpu.memory_space<vmem>>, vector<3x512xi16>
    %1 = arith.extsi %0 : vector<3x512xi16> to vector<3x512xi32>
    %2 = tpu.iota {dimensions = array<i32: 0>} : vector<8x512xi32>
    %3 = vector.extract_strided_slice %1 {offsets = [0, 0], sizes = [1, 512], strides = [1, 1]} : vector<3x512xi32> to vector<1x512xi32>
    %4 = vector.broadcast %3 : vector<1x512xi32> to vector<8x512xi32>
    %5 = arith.cmpi eq, %4, %2 : vector<8x512xi32>
    %6 = arith.extui %5 : vector<8x512xi1> to vector<8x512xi32>
    %7 = arith.sitofp %6 : vector<8x512xi32> to vector<8x512xf32>
    %c0_1 = arith.constant 0 : index
    %c0_2 = arith.constant 0 : index
    %8 = vector.load %arg4[%c0_1, %c0_2] : memref<24x512xf32, #tpu.memory_space<vmem>>, vector<8x512xf32>
    tpu.vector_store %arg4[%c0_1, %c0_2], %7 {strides = array<i32>} : memref<24x512xf32, #tpu.memory_space<vmem>>, vector<8x512xf32>,
    %9 = vector.extract_strided_slice %1 {offsets = [1, 0], sizes = [1, 512], strides = [1, 1]} : vector<3x512xi32> to vector<1x512xi32>
    %10 = vector.broadcast %9 : vector<1x512xi32> to vector<8x512xi32>
    %11 = arith.cmpi eq, %10, %2 : vector<8x512xi32>
    %12 = arith.extui %11 : vector<8x512xi1> to vector<8x512xi32>
    %13 = arith.sitofp %12 : vector<8x512xi32> to vector<8x512xf32>
    %c8 = arith.constant 8 : index
    %c0_3 = arith.constant 0 : index
    %14 = vector.load %arg4[%c8, %c0_3] : memref<24x512xf32, #tpu.memory_space<vmem>>, vector<8x512xf32>
    tpu.vector_store %arg4[%c8, %c0_3], %13 {strides = array<i32>} : memref<24x512xf32, #tpu.memory_space<vmem>>, vector<8x512xf32>,
    %15 = vector.extract_strided_slice %1 {offsets = [2, 0], sizes = [1, 512], strides = [1, 1]} : vector<3x512xi32> to vector<1x512xi32>
    %16 = vector.broadcast %15 : vector<1x512xi32> to vector<8x512xi32>
    %17 = arith.cmpi eq, %16, %2 : vector<8x512xi32>
    %18 = arith.extui %17 : vector<8x512xi1> to vector<8x512xi32>
    %19 = arith.sitofp %18 : vector<8x512xi32> to vector<8x512xf32>
    %c16 = arith.constant 16 : index
    %c0_4 = arith.constant 0 : index
    %20 = vector.load %arg4[%c16, %c0_4] : memref<24x512xf32, #tpu.memory_space<vmem>>, vector<8x512xf32>
    tpu.vector_store %arg4[%c16, %c0_4], %19 {strides = array<i32>} : memref<24x512xf32, #tpu.memory_space<vmem>>, vector<8x512xf32>,
    %c0_5 = arith.constant 0 : index
    %c0_6 = arith.constant 0 : index
    %21 = vector.load %arg2[%c0_5, %c0_6] : memref<48x24xf32, #tpu.memory_space<vmem>>, vector<48x24xf32>
    %c0_7 = arith.constant 0 : index
    %c0_8 = arith.constant 0 : index
    %22 = vector.load %arg4[%c0_7, %c0_8] : memref<24x512xf32, #tpu.memory_space<vmem>>, vector<24x512xf32>
    %cst = arith.constant dense<0.000000e+00> : vector<48x512xf32>
    %23 = tpu.matmul %21, %22, %cst {dimension_numbers = #tpu.dot_dimension_numbers<[1], [0], [0], [1], [0, 0, 1, 1], [], []>} : vector<48x24xf32>, vector<24x512xf32>, vector<48x512xf32> -> vector<48x512xf32>
    %24 = vector.extract_strided_slice %23 {offsets = [0, 0], sizes = [16, 512], strides = [1, 1]} : vector<48x512xf32> to vector<16x512xf32>
    %25 = vector.extract_strided_slice %23 {offsets = [16, 0], sizes = [16, 512], strides = [1, 1]} : vector<48x512xf32> to vector<16x512xf32>
    %26 = arith.mulf %24, %25 : vector<16x512xf32>
    %27 = vector.extract_strided_slice %23 {offsets = [32, 0], sizes = [16, 512], strides = [1, 1]} : vector<48x512xf32> to vector<16x512xf32>
    %28 = arith.mulf %26, %27 : vector<16x512xf32>
    %cst_9 = arith.constant dense<0.000000e+00> : vector<512xf32>
    %29 = vector.multi_reduction <add>, %28, %cst_9 [0] : vector<16x512xf32> to vector<512xf32>
    %30 = vector.shape_cast %29 : vector<512xf32> to vector<1x512xf32>
    %c0_10 = arith.constant 0 : index
    %c0_11 = arith.constant 0 : index
    %31 = vector.load %arg3[%c0_10, %c0_11] : memref<1x512xf32, #tpu.memory_space<vmem>>, vector<1x512xf32>
    tpu.vector_store %arg3[%c0_10, %c0_11], %30 {strides = array<i32>} : memref<1x512xf32, #tpu.memory_space<vmem>>, vector<1x512xf32>,
    return
  }
  func.func @transform_0(%arg0: i32) -> (i32, i32) {
    %c0_i32 = arith.constant 0 : i32
    %c0_i32_0 = arith.constant 0 : i32
    return %c0_i32, %arg0 : i32, i32
  }
  func.func @transform_1(%arg0: i32) -> (i32, i32) {
    %c0_i32 = arith.constant 0 : i32
    %c0_i32_0 = arith.constant 0 : i32
    %c0_i32_1 = arith.constant 0 : i32
    return %c0_i32, %c0_i32_0 : i32, i32
  }
  func.func @transform_2(%arg0: i32) -> (i32, i32) {
    %c0_i32 = arith.constant 0 : i32
    %c0_i32_0 = arith.constant 0 : i32
    return %c0_i32, %arg0 : i32, i32
  }
}

</mosaic_0001>

<bundles_post_ra>
// kernel: tpu_custom_call.1
= control target key start
LH: loop header
LB: loop body
LE: loop exit
PB: predicated region body
PF: predicated region fallthrough
CT: control target
= control target key end

     0   :  { %7 = vsyncpa [#allocation4], 0  ;;  %s1033_s0 = inlined_call_operand.vmem [shape: s16[3,1024], index: 0, kind: input, shape index: {}]   ;;  %s1034_s1 = inlined_call_operand.vmem [shape: f32[48,24], index: 1, kind: input, shape index: {}]   ;;  %s1035_s2 = inlined_call_operand.hbm [shape: f32[1,1024], index: 2, kind: output, shape index: {}]  }
   0x1   :  { %9 = vsyncpa [#allocation4 + $0x1], 0  ;;  %s869_s9 = smov 0   ;;  %s871_s10 = smov 0  }
   0x2   :  { %s873_s11 = smov 0   ;;  %s875_s12 = smov 0  }
   0x3 LB: > { %s890_s13 = sadd.s32 4294967295, %s847_s12   ;;  %s685_s14 = sadd.s32 4294967294, %s847_s12   ;;  %s847_s12 = sphi %s875_s12, %s1041_s12   ;;  %s843_s11 = sphi %s873_s11, %s1040_s11   ;;  %s839_s10 = sphi %s871_s10, %s1039_s10   ;;  %s835_s9 = sphi %s869_s9, %s1038_s9  }
   0x4   : > { %s894_s15 = sadd.s32 1, %s847_s12   ;;  %s69_s16 = sadd.s32 1, %s843_s11 }
   0x5   : > { %s66_s17 = ssub.s32 %s847_s12, %s894_s15  ;;  %p79_p0 = scmp.ne.s32.totalorder %s843_s11, %s839_s10 }
   0x6   : > { %p67_p1 = scmp.eq.s32.totalorder %s66_s17, 0  ;;  %p80_p2 = scmp.eq.s32.totalorder %s890_s13, 1 }
   0x7   : > { %p85_p3 = scmp.ne.s32.totalorder %s839_s10, %s835_s9  ;;  %p86_p4 = scmp.eq.s32.totalorder %s685_s14, 1 }
   0x8   : > { %s905_s18 = scalar_select %p67_p1, %s843_s11, %s69_s16  }
   0x9   : > { %p907_p5 = por %p80_p2, %p79_p0  ;;  %p911_p6 = por %p86_p4, %p85_p3 }
   0xa   : > { %p688_p7 = scmp.ge.s32.totalorder %s847_s12, 1  ;;  %p116_p8 = scmp.lt.s32.totalorder %s847_s12, 3 }
   0xc   : > { %p117_p9 = pnand %p688_p7, %p116_p8 }
   0xd   : > { %s690_s21 = sshll.u32 (!%p117_p9), %s890_s13, 2  ;;  %v148_v0 = vlaneseq (!%p117_p9)  ;;  %v849_v1 = vmov (!%p117_p9), 0.0   ;;  %v850_v28 = vmov (!%p117_p9), 1.0|1.0   ;;  %vm312_vm12 = vcmask (!%p117_p9), 195584   ;;  %v294_v37 = vld [vmem:[%s1034_s1] sm:$0xff] (!%p117_p9) }
   0xe   : > { %120 = sbr.rel (%p117_p9) target bundleno = 312 (0x138), region = 28  ;;  %p139_p10 = scmp.lt.s32.totalorder (!%p117_p9), %s690_s21, 7  ;;  %395 = vmatprep.mubr.f32.mxu0 (!%p117_p9), %v849_v1  ;;  %496 = vmatprep.mubr.f32.mxu1 (!%p117_p9), %v849_v1  ;;  %v851_v38 = vmov (!%p117_p9), 1.0   ;;  %v295_v39 = vld [vmem:[%s1034_s1 + $0x8] sm:$0xff] (!%p117_p9)  ;;  %v296_v40 = vld [vmem:[%s1034_s1 + $0x10] sm:$0xff] (!%p117_p9)  ;;  %v297_v41 = vld [vmem:[%s1034_s1 + $0x18] sm:$0xff] (!%p117_p9) }
   0xf   : > { %v921_v2 = vshrl.u32 (!%p117_p9), %v148_v0, 7  ;;  %v298_v42 = vld [vmem:[%s1034_s1 + $0x20] sm:$0xff] (!%p117_p9)  ;;  %v299_v43 = vld [vmem:[%s1034_s1 + $0x28] sm:$0xff] (!%p117_p9)  ;;  %s135_s16 = sand.u32 (!%p117_p9), 1, %s839_s10  }
  0x10   : > { %s689_s17 = sshll.u32 (!%p117_p9), %s135_s16, 2  ;;  %s612_s27 = scalar_lea.sflag (!%p117_p9), [#allocation4], %s135_s16 }
  0x11   : > { %v156_v3 = vsub.s32 (!%p117_p9), 4, %v921_v2  ;;  %v204_v4 = vsub.s32 (!%p117_p9), 5, %v921_v2  ;;  %v152_v6 = vsub.s32 (!%p117_p9), 0, %v921_v2  ;;  %v200_v7 = vsub.s32 (!%p117_p9), 1, %v921_v2 }
  0x12   : > { %v248_v10 = vsub.s32 (!%p117_p9), 2, %v921_v2  ;;  %v252_v11 = vsub.s32 (!%p117_p9), 6, %v921_v2 }
  0x15   : > { %s1043_s21 = smov (!%p139_p10, %s690_s21), 7 }
  0x16   : > { %s691_s22 = sshll.u32 %s1043_s21, 1  ;;  %s721_s21 = sshll.u32 %s890_s13, 6 }
  0x17   : > { %s142_s25 = scalar_lea.vmem %s1033_s0, %s691_s22  ;;  %s137_s22 = scalar_lea.vmem [#allocation3], %s689_s17 }
  0x18   : > { %v145_v5 = vld [vmem:[%s142_s25] sm:$0xff]  ;;  %s626_s23 = sshll.u32 %s137_s22, 4  ;;  %s991_s26 = scalar_lea.hbm %s1035_s2, %s721_s21  ;;  %s993_s23 = int_to_ptr.vmem [resolvable:$true] %s626_s23 }
  0x19   : > { %v146_v8 = vunpack.c.l.b16 %v145_v5  ;;  %v147_v9 = vunpack.c.h.b16 %v145_v5  ;;  %s785_s28 = scalar_lea.vmem %s993_s23, 64  ;;  %s853_s13 = smov [#allocation3]  }
  0x1a   : > { %p786_p11 = scmp.ne.s32.totalorder %s993_s23, %s785_s28  ;;  %s789_s29 = sshll.u32 %s853_s13, 4  ;;  %s790_s29 = int_to_ptr.vmem [resolvable:$false] %s789_s29 }
  0x1b   : > { %v157_v12 = vrot.slane %v146_v8, %v156_v3  ;;  %v205_v13 = vrot.slane %v146_v8, %v204_v4  ;;  %v165_v14 = vrot.slane %v147_v9, %v156_v3  ;;  %v213_v15 = vrot.slane %v147_v9, %v204_v4  ;;  %s791_s30 = scalar_lea.vmem %s790_s29, 128  ;;  %p792_p0 = scmp.lt.s32.totalorder %s993_s23, %s790_s29 }
  0x1c   : > { %v153_v16 = vrot.slane %v146_v8, %v152_v6  ;;  %v201_v17 = vrot.slane %v146_v8, %v200_v7  ;;  %v161_v18 = vrot.slane %v147_v9, %v152_v6  ;;  %v209_v19 = vrot.slane %v147_v9, %v200_v7  ;;  %p787_p12 = pnand %p786_p11, %p907_p5  ;;  %p793_p1 = scmp.lt.s32.totalorder %s791_s30, %s785_s28 }
  0x1d   : > { %v173_v20 = vrot.slane %v157_v12, %v152_v6  ;;  %v221_v21 = vrot.slane %v205_v13, %v200_v7  ;;  %v181_v22 = vrot.slane %v165_v14, %v152_v6  ;;  %v229_v23 = vrot.slane %v213_v15, %v200_v7 }
  0x1e   : > { %v169_v24 = vrot.slane %v153_v16, %v152_v6  ;;  %v217_v25 = vrot.slane %v201_v17, %v200_v7  ;;  %v177_v26 = vrot.slane %v161_v18, %v152_v6  ;;  %v225_v27 = vrot.slane %v209_v19, %v200_v7  ;;  %p788_p13 = pneg %p787_p12  ;;  %p794_p2 = por %p793_p1, %p792_p0 }
  0x1f   : > { %vm183_vm0 = vcmp.eq.s32.totalorder %v173_v20, %v921_v2  ;;  %vm231_vm1 = vcmp.eq.s32.totalorder %v221_v21, %v921_v2  ;;  %vm185_vm2 = vcmp.eq.s32.totalorder %v181_v22, %v921_v2  ;;  %vm233_vm3 = vcmp.eq.s32.totalorder %v229_v23, %v921_v2 }
  0x20   : > { %vm734_vm4 = vmpackc.low %vm231_vm1, %vm183_vm0  ;;  %vm182_vm5 = vcmp.eq.s32.totalorder %v169_v24, %v921_v2  ;;  %vm230_vm6 = vcmp.eq.s32.totalorder %v217_v25, %v921_v2  ;;  %vm184_vm7 = vcmp.eq.s32.totalorder %v177_v26, %v921_v2  ;;  %vm232_vm8 = vcmp.eq.s32.totalorder %v225_v27, %v921_v2  ;;  %p795_p3 = pnand %p794_p2, %p788_p13 }
  0x21   : > { %735 = vmatprep.subr.msk.bf16.mxu0 %vm734_vm4, %v850_v28  ;;  %vm738_vm9 = vmpackc.low %vm233_vm3, %vm185_vm2  ;;  %v253_v29 = vrot.slane %v146_v8, %v252_v11  ;;  %v261_v30 = vrot.slane %v147_v9, %v252_v11  ;;  %v249_v31 = vrot.slane %v146_v8, %v248_v10  ;;  %v257_v32 = vrot.slane %v147_v9, %v248_v10 }
  0x22   : > { %739 = vmatprep.subr.msk.bf16.mxu1 %vm738_vm9, %v850_v28  ;;  %vm736_vm10 = vmpackc.low %vm230_vm6, %vm182_vm5  ;;  %vm608_vm1 = vcmp.lt.s32.totalorder %v148_v0, 512 }
  0x23   : > { %737 = vmatpush1.bf16.msk.msra.mxu0 %vm736_vm10, %v850_v28  ;;  %vm740_vm11 = vmpackc.low %vm232_vm8, %vm184_vm7  ;;  %v269_v33 = vrot.slane %v253_v29, %v248_v10  ;;  %v277_v34 = vrot.slane %v261_v30, %v248_v10  ;;  %v265_v35 = vrot.slane %v249_v31, %v248_v10  ;;  %v273_v36 = vrot.slane %v257_v32, %v248_v10 }
  0x24   : > { %741 = vmatpush1.bf16.msk.msra.mxu1 %vm740_vm11, %v850_v28 }
  0x25   : > { %vm279_vm13 = vcmp.eq.s32.totalorder %v269_v33, %v921_v2  ;;  %vm281_vm14 = vcmp.eq.s32.totalorder %v277_v34, %v921_v2  ;;  %vm278_vm15 = vcmp.eq.s32.totalorder %v265_v35, %v921_v2  ;;  %vm280_vm0 = vcmp.eq.s32.totalorder %v273_v36, %v921_v2 }
  0x26   : > { %726 = vmatprep.subr.msk.mxu0 %vm279_vm13, %v851_v38  ;;  %732 = vmatprep.subr.msk.mxu1 %vm281_vm14, %v851_v38  ;;  %v852_v33 = vmov 1966171168  }
  0x27   : > { %727 = vmatpush1.msk.msra.mxu0 %vm278_vm15, %v851_v38  ;;  %v584_v34 = vunpack.c.l.s4 %v852_v33 }
  0x28   : > { %733 = vmatpush1.msk.msra.mxu1 %vm280_vm0, %v851_v38  ;;  %704 = vmatmul.mubr.msk.f32.vlgmr.msra.gmra.mrb[0].mxu0 %vm312_vm12, %v294_v37 }
  0x29   : > { %710 = vmatmul.mubr.msk.f32.vlgmr.msra.gmra.mrb[0].mxu1 %vm312_vm12, %v294_v37  ;;  %401 = vmatprep.mubr.f32.mxu0 %v849_v1 }
  0x2a   : > { %502 = vmatprep.mubr.f32.mxu1 %v849_v1 }
  0x2c   : > { %705 = vmatmul.mubr.msk.f32.gmra.mrb[2].mxu0 %vm312_vm12, %v295_v39 }
  0x2d   : > { %711 = vmatmul.mubr.msk.f32.gmra.mrb[2].mxu1 %vm312_vm12, %v295_v39  ;;  %407 = vmatprep.mubr.f32.mxu0 %v849_v1 }
  0x2e   : > { %508 = vmatprep.mubr.f32.mxu1 %v849_v1 }
  0x30   : > { %706 = vmatmul.mubr.msk.f32.gmra.mrb[4].mxu0 %vm312_vm12, %v296_v40 }
  0x31   : > { %712 = vmatmul.mubr.msk.f32.gmra.mrb[4].mxu1 %vm312_vm12, %v296_v40  ;;  %413 = vmatprep.mubr.f32.mxu0 %v849_v1 }
  0x32   : > { %514 = vmatprep.mubr.f32.mxu1 %v849_v1 }
  0x34   : > { %707 = vmatmul.mubr.msk.f32.gmra.mrb[6].mxu0 %vm312_vm12, %v297_v41 }
  0x35   : > { %713 = vmatmul.mubr.msk.f32.gmra.mrb[6].mxu1 %vm312_vm12, %v297_v41  ;;  %419 = vmatprep.mubr.f32.mxu0 %v849_v1 }
  0x36   : > { %520 = vmatprep.mubr.f32.mxu1 %v849_v1 }
  0x38   : > { %708 = vmatmul.mubr.msk.f32.gmra.mrb[8].mxu0 %vm312_vm12, %v298_v42 }
  0x39   : > { %714 = vmatmul.mubr.msk.f32.gmra.mrb[8].mxu1 %vm312_vm12, %v298_v42  ;;  %425 = vmatprep.mubr.f32.mxu0 %v849_v1 }
  0x3a   : > { %526 = vmatprep.mubr.f32.mxu1 %v849_v1 }
  0x3c   : > { %709 = vmatmul.mubr.msk.f32.gmra.mrb[10].mxu0 %vm312_vm12, %v299_v43 }
  0x3d   : > { %715 = vmatmul.mubr.msk.f32.gmra.mrb[10].mxu1 %vm312_vm12, %v299_v43  ;;  %v585_v43 = vunpack.c.0.s8 %v584_v34 }
  0xfb   : > { %v397_v44 = vpop.f32.mrb[0].mxu0 }
  0xfc   : > { %v498_v45 = vpop.f32.mrb[0].mxu1  ;;  %v399_v46 = vpop.f32.mrb[1].mxu0 }
  0xfd   : > { %v500_v47 = vpop.f32.mrb[1].mxu1 }
  0xff   : > { %v403_v48 = vpop.f32.mrb[2].mxu0 }
 0x100   : > { %v504_v49 = vpop.f32.mrb[2].mxu1  ;;  %v405_v50 = vpop.f32.mrb[3].mxu0 }
 0x101   : > { %v506_v51 = vpop.f32.mrb[3].mxu1 }
 0x103   : > { %v409_v52 = vpop.f32.mrb[4].mxu0 }
 0x104   : > { %v533_v53 = vmul.f32 %v409_v52, %v397_v44  ;;  %v510_v54 = vpop.f32.mrb[4].mxu1  ;;  %v411_v55 = vpop.f32.mrb[5].mxu0  ;;  %v588_v52 = vsub.s32 %v585_v43, %v921_v2 }
 0x105   : > { %v535_v56 = vmul.f32 %v510_v54, %v498_v45  ;;  %v534_v57 = vmul.f32 %v411_v55, %v399_v46  ;;  %v512_v58 = vpop.f32.mrb[5].mxu1 }
 0x106   : > { %v536_v59 = vmul.f32 %v512_v58, %v500_v47 }
 0x107   : > { %v415_v60 = vpop.f32.mrb[6].mxu0 }
 0x108   : > { %v537_v61 = vmul.f32 %v415_v60, %v403_v48  ;;  %v516_v62 = vpop.f32.mrb[6].mxu1  ;;  %v417_v63 = vpop.f32.mrb[7].mxu0 }
 0x109   : > { %v539_v1 = vmul.f32 %v516_v62, %v504_v49  ;;  %v538_v3 = vmul.f32 %v417_v63, %v405_v50  ;;  %v518_v4 = vpop.f32.mrb[7].mxu1 }
 0x10a   : > { %v540_v5 = vmul.f32 %v518_v4, %v506_v51 }
 0x10b   : > { %v421_v6 = vpop.f32.mrb[8].mxu0 }
 0x10c   : > { %v541_v7 = vmul.f32 %v533_v53, %v421_v6  ;;  %v522_v8 = vpop.f32.mrb[8].mxu1  ;;  %v423_v9 = vpop.f32.mrb[9].mxu0 }
 0x10d   : > { %v543_v10 = vmul.f32 %v535_v56, %v522_v8  ;;  %v542_v11 = vmul.f32 %v534_v57, %v423_v9  ;;  %v524_v12 = vpop.f32.mrb[9].mxu1 }
 0x10e   : > { %v544_v13 = vmul.f32 %v536_v59, %v524_v12 }
 0x10f   : > { %v427_v14 = vpop.f32.mrb[10].mxu0 }
 0x110   : > { %v545_v15 = vmul.f32 %v537_v61, %v427_v14  ;;  %v528_v16 = vpop.f32.mrb[10].mxu1  ;;  %v429_v17 = vpop.f32.mrb[11].mxu0 }
 0x111   : > { %v547_v18 = vmul.f32 %v539_v1, %v528_v16  ;;  %v546_v19 = vmul.f32 %v538_v3, %v429_v17  ;;  %v530_v20 = vpop.f32.mrb[11].mxu1 }
 0x112   : > { %v549_v21 = vadd.f32 %v545_v15, %v541_v7  ;;  %v548_v22 = vmul.f32 %v540_v5, %v530_v20 }
 0x113   : > { %v563_v23 = vadd.f32 %v547_v18, %v543_v10  ;;  %v556_v24 = vadd.f32 %v546_v19, %v542_v11 }
 0x114   : > { %v550_v25 = vrot.slane %v549_v21, 4  ;;  %v570_v26 = vadd.f32 %v548_v22, %v544_v13 }
 0x115   : > { %v564_v27 = vrot.slane %v563_v23, 4  ;;  %v557_v28 = vrot.slane %v556_v24, 4 }
 0x116   : > { %v551_v29 = vadd.f32 %v550_v25, %v549_v21  ;;  %v571_v30 = vrot.slane %v570_v26, 4 }
 0x117   : > { %v565_v31 = vadd.f32 %v564_v27, %v563_v23  ;;  %v558_v32 = vadd.f32 %v557_v28, %v556_v24 }
 0x118   : > { %v552_v35 = vrot.slane %v551_v29, 2  ;;  %v572_v36 = vadd.f32 %v571_v30, %v570_v26 }
 0x119   : > { %v566_v37 = vrot.slane %v565_v31, 2  ;;  %v559_v38 = vrot.slane %v558_v32, 2 }
 0x11a   : > { %v553_v39 = vadd.f32 %v552_v35, %v551_v29  ;;  %v573_v40 = vrot.slane %v572_v36, 2 }
 0x11b   : > { %v567_v41 = vadd.f32 %v566_v37, %v565_v31  ;;  %v560_v42 = vadd.f32 %v559_v38, %v558_v32 }
 0x11c   : > { %v554_v44 = vrot.slane %v553_v39, 1  ;;  %v574_v45 = vadd.f32 %v573_v40, %v572_v36 }
 0x11d   : > { %v568_v46 = vrot.slane %v567_v41, 1  ;;  %v561_v47 = vrot.slane %v560_v42, 1 }
 0x11e   : > { %v555_v48 = vadd.f32 %v554_v44, %v553_v39  ;;  %v575_v49 = vrot.slane %v574_v45, 1 }
 0x11f   : > { %v569_v50 = vadd.f32 %v568_v46, %v567_v41  ;;  %v562_v51 = vadd.f32 %v561_v47, %v560_v42 }
 0x120   : > { %v576_v53 = vadd.f32 %v575_v49, %v574_v45 }
 0x121   : > { %v581_v54 = vcombine.low %v555_v48, %v562_v51 }
 0x122   : > { %v582_v55 = vcombine.low %v569_v50, %v576_v53 }
 0x123   : > { %v589_v56 = vrot.slane %v581_v54, %v588_v52 }
 0x124   : > { %v596_v57 = vrot.slane %v582_v55, %v588_v52 }
 0x126   : > { %v597_v58 = vcombine.low %v589_v56, %v596_v57 }
 0x128   : > { %v604_v59 = vrot.slane %v597_v58, %v588_v52 }
 0x12a   : > { %610 = vst.msk [vmem:[%s137_s22] sm:$0xf] %vm608_vm1, %v604_v59 }
 0x12b   : > { %798 = shalt.err (!%p795_p3)
}
 0x12c   : > { %s799_s3 = scalar_lea.hbm %s991_s26, 64  ;;  %s803_s6 = scalar_lea.hbm %s1035_s2, 128 }
 0x12d   : > { %p800_p4 = scmp.ne.s32.totalorder %s991_s26, %s799_s3  ;;  %p804_p9 = scmp.lt.u32.totalorder %s991_s26, %s1035_s2 }
 0x12e   : > { %p805_p10 = scmp.lt.u32.totalorder %s803_s6, %s799_s3  ;;  %p807_p12 = scmp.lt.u32.totalorder %s799_s3, %s991_s26 }
 0x12f   : > { %p801_p7 = pnand %p800_p4, %p907_p5 }
 0x130   : > { %p806_p11 = por %p805_p10, %p804_p9 }
 0x131   : > { %p802_p8 = pneg %p801_p7 }
 0x132   : > { %p808_p13 = por %p807_p12, %p806_p11 }
 0x134   : > { %p809_p0 = pnand %p808_p13, %p802_p8 }
 0x136   : > { %812 = shalt.err (!%p809_p0)
}
 0x137   : > { %742 = dma.vmem_to_hbm [thread:$0]  (%p907_p5), %s993_s23, 64, %s991_s26, %s612_s27  }
 0x138 PF: > { %p748_p1 = scmp.ge.s32.totalorder %s847_s12, 2  ;;  %s638_s14 = sand.u32 1, %s835_s9  }
 0x139   : > { %s639_s16 = scalar_lea.sflag [#allocation4], %s638_s14 }
 0x13a   : > { %p745_p2 = pnand %p748_p1, %p911_p6 }
 0x13c   : > { %830 = dma.done.wait (!%p745_p2), %s639_s16, 64  }
 0x13d   : > { %832 = vsyncadd (!%p745_p2), %s639_s16, 4294967232  ;;  %p12_p3 = scmp.ge.s32.totalorder %s894_s15, 4   ;;  %s1038_s9 = smov %s839_s10 }
 0x13e   : > { %s1039_s10 = smov %s843_s11  ;;  %s1040_s11 = smov %s905_s18 }
 0x13f   : > { %s1041_s12 = smov %s894_s15  ;;  %14 = sbr.rel (!%p12_p3) target bundleno = 3 (0x3), region = 63 }
 0x146   :  { %644 = vsyncpa [#allocation4], 1 }
 0x147   :  { %646 = vsyncpa [#allocation4 + $0x1], 1 }

</bundles_post_ra>
